<compile_context>
chip_gen: v7x
topology: tpu7x:2x2x1
jax: 0.10.0
libtpu: 0.0.40
codegen_flags: <defaults>
</compile_context>

<pallas_src>
import numpy as np
import jax
import jax.numpy as jnp
from jax.experimental import pallas as pl
from jax.experimental.pallas import tpu as pltpu


# ---------------------------------------------------------------------------
# static helpers (PyTorch adaptive-pool bin boundaries, all compile-time)
# ---------------------------------------------------------------------------
def _bin_bounds(in_size: int, out_size: int):
    starts = [(j * in_size) // out_size for j in range(out_size)]
    ends = [-(-((j + 1) * in_size) // out_size) for j in range(out_size)]  # ceil
    return starts, ends


def _avg_matrix_t(H: int, W: int) -> np.ndarray:
    """A_T[j, h*W + w] = 1/(H * bin_size_j) if w is in horizontal bin j (of 3).

    Folds the H reduction into the matmul so adaptive_avg_pool2d(x, (1,3)) is a
    single (3, H*W) @ (H*W, B*C) contraction on the MXU.
    """
    starts, ends = _bin_bounds(W, 3)
    A = np.zeros((3, H * W), dtype=np.float32)
    for j in range(3):
        size = ends[j] - starts[j]
        for h in range(H):
            A[j, h * W + starts[j]:h * W + ends[j]] = 1.0 / (H * size)
    return A


def _shift_masks(Ws: int, out_w: int) -> np.ndarray:
    """masks[d, j] = 1 iff input column (j + d) belongs to adaptive-max bin j.

    Since out_w = Ws//3*3, every bin's columns sit at offsets 0..(Ws-out_w)
    from the bin index, so num_shifts <= 3 and the whole max-pool is a max over
    a few statically shifted slices (pure VPU work, no gathers, no MXU).
    """
    starts, ends = _bin_bounds(Ws, out_w)
    num_shifts = max(e - 1 - j for j, e in enumerate(ends)) + 1
    masks = np.zeros((num_shifts, out_w), dtype=np.float32)
    for j in range(out_w):
        for c in range(starts[j], ends[j]):
            masks[c - j, j] = 1.0
    return masks


# ---------------------------------------------------------------------------
# Pallas kernels
# ---------------------------------------------------------------------------
def _avgpool_13(x_ref, at_ref, feat_ref):
    # adaptive_avg_pool2d(x, (1, 3)) as one MXU matmul; output kept transposed
    # (3, rows) so the large dimension sits on lanes (lane-dense writeback).
    feat_ref[...] = jax.lax.dot_general(
        at_ref[...], x_ref[...],
        dimension_numbers=(((1,), (1,)), ((), ())),   # contract over H*W
        preferred_element_type=jnp.float32,
    ).astype(feat_ref.dtype)


def _make_fused_kernel(num_shifts: int, out_w: int, L: int):
    def kernel(x_ref, at_ref, s_ref, mask_ref, feat_ref, sal_ref):
        # ---- avg-pool part: runs every grid step on its row tile of x ----
        _avgpool_13(x_ref, at_ref, feat_ref)

        # ---- max-pool + chunk part: tiny, done once (grid step 0) --------
        @pl.when(pl.program_id(0) == 0)
        def _():
            sv = s_ref[...]                                   # (R, Ws) native dtype
            neg = jnp.asarray(-jnp.inf, dtype=sv.dtype)
            pooled = None
            for d in range(num_shifts):                       # static, <= 3
                cand = jnp.where(mask_ref[d:d + 1, :] > 0,
                                 sv[:, d:d + out_w], neg)
                pooled = cand if pooled is None else jnp.maximum(pooled, cand)
            # torch.chunk(.., 3, dim=-1) written directly as (3, R, L).
            sal_ref[0, :, :] = pooled[:, 0:L].astype(sal_ref.dtype)
            sal_ref[1, :, :] = pooled[:, L:2 * L].astype(sal_ref.dtype)
            sal_ref[2, :, :] = pooled[:, 2 * L:3 * L].astype(sal_ref.dtype)

    return kernel


# ---------------------------------------------------------------------------
# wrapper
# ---------------------------------------------------------------------------
def hor_third_pattern(x, s=None, *, row_tile=512):
    B, C, H, W = x.shape
    BC, HW = B * C, H * W
    x2 = x.reshape(BC, HW)                                   # free row-major reshape
    A_T = jnp.asarray(_avg_matrix_t(H, W), dtype=x.dtype)

    TM = BC if BC <= row_tile else row_tile                  # full dim or mult. of 8
    grid = (pl.cdiv(BC, TM),)
    x_spec = pl.BlockSpec((TM, HW), lambda i: (i, 0))
    a_spec = pl.BlockSpec((3, HW), lambda i: (0, 0))
    feat_spec = pl.BlockSpec((3, TM), lambda i: (0, i))

    cparams = pltpu.CompilerParams(
        dimension_semantics=("arbitrary",),
        vmem_limit_bytes=32 * 1024 * 1024,
    )

    if s is None:
        feat_t = pl.pallas_call(
            _avgpool_13,
            out_shape=jax.ShapeDtypeStruct((3, BC), x.dtype),
            grid=grid,
            in_specs=[x_spec, a_spec],
            out_specs=feat_spec,
            compiler_params=cparams,
        )(x2, A_T)
        return feat_t.T.reshape(B, C, 1, 3)

    Bs, Cs, Hs, Ws = s.shape
    out_w = Ws // 3 * 3
    if out_w < 3:
        raise ValueError(f"saliency width {Ws} too small for HorThirdPattern")
    L = out_w // 3
    R = Bs * Cs * Hs
    s2 = s.reshape(R, Ws)
    masks = jnp.asarray(_shift_masks(Ws, out_w))
    num_shifts = int(masks.shape[0])

    feat_t, sal3 = pl.pallas_call(
        _make_fused_kernel(num_shifts, out_w, L),
        out_shape=(
            jax.ShapeDtypeStruct((3, BC), x.dtype),
            jax.ShapeDtypeStruct((3, R, L), s.dtype),
        ),
        grid=grid,
        in_specs=[
            x_spec,
            a_spec,
            pl.BlockSpec((R, Ws), lambda i: (0, 0)),
            pl.BlockSpec((num_shifts, out_w), lambda i: (0, 0)),
        ],
        out_specs=[
            feat_spec,
            pl.BlockSpec((3, R, L), lambda i: (0, 0, 0)),
        ],
        compiler_params=cparams,
    )(x2, A_T, s2, masks)

    # tiny layout plumbing back to the PyTorch NCHW-ish shapes (pure reshape/transpose)
    feat = feat_t.T.reshape(B, C, 1, 3)
    feat_sal = jnp.transpose(sal3, (1, 2, 0)).reshape(Bs, Cs * Hs * L, 1, 3)
    return feat, feat_sal


# ---------------------------------------------------------------------------
# pure-JAX reference for validation
# ---------------------------------------------------------------------------
def _ref_forward(x, s):
    B, C, H, W = x.shape
    st, en = _bin_bounds(W, 3)
    feat = jnp.stack(
        [x[:, :, :, st[i]:en[i]].mean(axis=(2, 3)) for i in range(3)], axis=-1)
    feat = feat[:, :, None, :]
    if s is None:
        return feat
    Bs, Cs, Hs, Ws = s.shape
    out_w = Ws // 3 * 3
    st2, en2 = _bin_bounds(Ws, out_w)
    pooled = jnp.stack(
        [s[:, :, :, st2[j]:en2[j]].max(axis=3) for j in range(out_w)], axis=-1)
    L = out_w // 3
    chunks = [pooled[:, :, :, j * L:(j + 1) * L].reshape(Bs, -1) for j in range(3)]
    feat_sal = jnp.stack(chunks, axis=2)[:, :, None, :]
    return feat, feat_sal


# ---------------------------------------------------------------------------
if __name__ == "__main__":
    key = jax.random.PRNGKey(0)
    kx, ks = jax.random.split(key)
    # x: feature map (B, C, H, W);  s: saliency map (B, 1, Hs, Ws)
    x = jax.random.normal(kx, (2, 4, 16, 16), dtype=jnp.float32)
    s = jax.random.normal(ks, (2, 1, 8, 16), dtype=jnp.float32)

    feat, feat_sal = hor_third_pattern(x, s)
    jax.block_until_ready((feat, feat_sal))

    feat_r, feat_sal_r = _ref_forward(x, s)
    assert feat.shape == (2, 4, 1, 3), feat.shape
    assert feat_sal.shape == (2, 1 * 8 * 5, 1, 3), feat_sal.shape
    assert np.allclose(np.asarray(feat), np.asarray(feat_r), atol=1e-5)
    assert np.allclose(np.asarray(feat_sal), np.asarray(feat_sal_r), atol=1e-5)

    # also exercise the s=None branch (the one MPPModule.forward uses)
    feat_only = hor_third_pattern(x, None)
    jax.block_until_ready(feat_only)
    assert np.allclose(np.asarray(feat_only), np.asarray(feat_r), atol=1e-5)

    print("KERNEL_OK")
</pallas_src>

<mosaic_0001>
module attributes {stable_mosaic.version = 11 : i64} {
  func.func @kernel(%arg0: i32, %arg1: memref<8x256xf32, #tpu.memory_space<vmem>>, %arg2: memref<3x256xf32, #tpu.memory_space<vmem>>, %arg3: memref<16x16xf32, #tpu.memory_space<vmem>>, %arg4: memref<2x15xf32, #tpu.memory_space<vmem>>, %arg5: memref<3x8xf32, #tpu.memory_space<vmem>>, %arg6: memref<3x16x5xf32, #tpu.memory_space<vmem>>) attributes {dimension_semantics = [#tpu.dimension_semantics<arbitrary>], iteration_bounds = array<i64: 1>, scalar_prefetch = 0 : i64, scratch_operands = 0 : i64, tpu.core_type = #tpu.core_type<tc>, window_params = [{transform_indices = @transform_0, window_bounds = array<i64: 8, 256>}, {pipeline_mode = #tpu.pipeline_mode<synchronous>, transform_indices = @transform_1, window_bounds = array<i64: 3, 256>}, {pipeline_mode = #tpu.pipeline_mode<synchronous>, transform_indices = @transform_2, window_bounds = array<i64: 16, 16>}, {pipeline_mode = #tpu.pipeline_mode<synchronous>, transform_indices = @transform_3, window_bounds = array<i64: 2, 15>}, {transform_indices = @transform_4, window_bounds = array<i64: 3, 8>}, {pipeline_mode = #tpu.pipeline_mode<synchronous>, transform_indices = @transform_5, window_bounds = array<i64: 3, 16, 5>}]} {
    %c0 = arith.constant 0 : index
    %c0_0 = arith.constant 0 : index
    %0 = vector.load %arg2[%c0, %c0_0] : memref<3x256xf32, #tpu.memory_space<vmem>>, vector<3x256xf32>
    %c0_1 = arith.constant 0 : index
    %c0_2 = arith.constant 0 : index
    %1 = vector.load %arg1[%c0_1, %c0_2] : memref<8x256xf32, #tpu.memory_space<vmem>>, vector<8x256xf32>
    %cst = arith.constant dense<0.000000e+00> : vector<3x8xf32>
    %2 = tpu.matmul %0, %1, %cst {dimension_numbers = #tpu.dot_dimension_numbers<[1], [1], [0], [0], [0, 0, 1, 0], [], []>} : vector<3x256xf32>, vector<8x256xf32>, vector<3x8xf32> -> vector<3x8xf32>
    %c0_3 = arith.constant 0 : index
    %c0_4 = arith.constant 0 : index
    %3 = vector.load %arg5[%c0_3, %c0_4] : memref<3x8xf32, #tpu.memory_space<vmem>>, vector<3x8xf32>
    tpu.vector_store %arg5[%c0_3, %c0_4], %2 {strides = array<i32>} : memref<3x8xf32, #tpu.memory_space<vmem>>, vector<3x8xf32>,
    %c0_i32 = arith.constant 0 : i32
    %4 = arith.cmpi eq, %arg0, %c0_i32 : i32
    %5 = arith.extui %4 : i1 to i32
    %c0_i32_5 = arith.constant 0 : i32
    %6 = arith.cmpi ne, %5, %c0_i32_5 : i32
    scf.if %6 {
      %c0_6 = arith.constant 0 : index
      %c0_7 = arith.constant 0 : index
      %7 = vector.load %arg3[%c0_6, %c0_7] : memref<16x16xf32, #tpu.memory_space<vmem>>, vector<16x16xf32>
      %c0_8 = arith.constant 0 : index
      %c0_9 = arith.constant 0 : index
      %8 = vector.load %arg4[%c0_8, %c0_9] : memref<2x15xf32, #tpu.memory_space<vmem>>, vector<1x15xf32>
      %cst_10 = arith.constant 0.000000e+00 : f32
      %9 = vector.broadcast %cst_10 : f32 to vector<1x15xf32>
      %10 = arith.cmpf ogt, %8, %9 : vector<1x15xf32>
      %11 = vector.extract_strided_slice %7 {offsets = [0, 0], sizes = [16, 15], strides = [1, 1]} : vector<16x16xf32> to vector<16x15xf32>
      %cst_11 = arith.constant 0xFF800000 : f32
      %12 = vector.shape_cast %10 : vector<1x15xi1> to vector<1x15xi1>
      %13 = vector.broadcast %12 : vector<1x15xi1> to vector<16x15xi1>
      %14 = vector.broadcast %cst_11 : f32 to vector<16x15xf32>
      %15 = arith.select %13, %11, %14 : vector<16x15xi1>, vector<16x15xf32>
      %c1 = arith.constant 1 : index
      %c0_12 = arith.constant 0 : index
      %16 = vector.load %arg4[%c1, %c0_12] : memref<2x15xf32, #tpu.memory_space<vmem>>, vector<1x15xf32>
      %cst_13 = arith.constant 0.000000e+00 : f32
      %17 = vector.broadcast %cst_13 : f32 to vector<1x15xf32>
      %18 = arith.cmpf ogt, %16, %17 : vector<1x15xf32>
      %19 = vector.extract_strided_slice %7 {offsets = [0, 1], sizes = [16, 15], strides = [1, 1]} : vector<16x16xf32> to vector<16x15xf32>
      %cst_14 = arith.constant 0xFF800000 : f32
      %20 = vector.shape_cast %18 : vector<1x15xi1> to vector<1x15xi1>
      %21 = vector.broadcast %20 : vector<1x15xi1> to vector<16x15xi1>
      %22 = vector.broadcast %cst_14 : f32 to vector<16x15xf32>
      %23 = arith.select %21, %19, %22 : vector<16x15xi1>, vector<16x15xf32>
      %24 = arith.maximumf %15, %23 : vector<16x15xf32>
      %25 = vector.extract_strided_slice %24 {offsets = [0, 0], sizes = [16, 5], strides = [1, 1]} : vector<16x15xf32> to vector<16x5xf32>
      %c0_15 = arith.constant 0 : index
      %c0_16 = arith.constant 0 : index
      %c0_17 = arith.constant 0 : index
      %26 = vector.load %arg6[%c0_15, %c0_16, %c0_17] : memref<3x16x5xf32, #tpu.memory_space<vmem>>, vector<1x16x5xf32>
      %27 = vector.shape_cast %26 : vector<1x16x5xf32> to vector<16x5xf32>
      %28 = vector.shape_cast %25 : vector<16x5xf32> to vector<1x16x5xf32>
      tpu.vector_store %arg6[%c0_15, %c0_16, %c0_17], %28 {strides = array<i32>} : memref<3x16x5xf32, #tpu.memory_space<vmem>>, vector<1x16x5xf32>,
      %29 = vector.extract_strided_slice %24 {offsets = [0, 5], sizes = [16, 5], strides = [1, 1]} : vector<16x15xf32> to vector<16x5xf32>
      %c1_18 = arith.constant 1 : index
      %c0_19 = arith.constant 0 : index
      %c0_20 = arith.constant 0 : index
      %30 = vector.load %arg6[%c1_18, %c0_19, %c0_20] : memref<3x16x5xf32, #tpu.memory_space<vmem>>, vector<1x16x5xf32>
      %31 = vector.shape_cast %30 : vector<1x16x5xf32> to vector<16x5xf32>
      %32 = vector.shape_cast %29 : vector<16x5xf32> to vector<1x16x5xf32>
      tpu.vector_store %arg6[%c1_18, %c0_19, %c0_20], %32 {strides = array<i32>} : memref<3x16x5xf32, #tpu.memory_space<vmem>>, vector<1x16x5xf32>,
      %33 = vector.extract_strided_slice %24 {offsets = [0, 10], sizes = [16, 5], strides = [1, 1]} : vector<16x15xf32> to vector<16x5xf32>
      %c2 = arith.constant 2 : index
      %c0_21 = arith.constant 0 : index
      %c0_22 = arith.constant 0 : index
      %34 = vector.load %arg6[%c2, %c0_21, %c0_22] : memref<3x16x5xf32, #tpu.memory_space<vmem>>, vector<1x16x5xf32>
      %35 = vector.shape_cast %34 : vector<1x16x5xf32> to vector<16x5xf32>
      %36 = vector.shape_cast %33 : vector<16x5xf32> to vector<1x16x5xf32>
      tpu.vector_store %arg6[%c2, %c0_21, %c0_22], %36 {strides = array<i32>} : memref<3x16x5xf32, #tpu.memory_space<vmem>>, vector<1x16x5xf32>,
    } else {
    }
    return
  }
  func.func @transform_0(%arg0: i32) -> (i32, i32) {
    %c0_i32 = arith.constant 0 : i32
    %c0_i32_0 = arith.constant 0 : i32
    return %arg0, %c0_i32 : i32, i32
  }
  func.func @transform_1(%arg0: i32) -> (i32, i32) {
    %c0_i32 = arith.constant 0 : i32
    %c0_i32_0 = arith.constant 0 : i32
    %c0_i32_1 = arith.constant 0 : i32
    return %c0_i32, %c0_i32_0 : i32, i32
  }
  func.func @transform_2(%arg0: i32) -> (i32, i32) {
    %c0_i32 = arith.constant 0 : i32
    %c0_i32_0 = arith.constant 0 : i32
    %c0_i32_1 = arith.constant 0 : i32
    return %c0_i32, %c0_i32_0 : i32, i32
  }
  func.func @transform_3(%arg0: i32) -> (i32, i32) {
    %c0_i32 = arith.constant 0 : i32
    %c0_i32_0 = arith.constant 0 : i32
    %c0_i32_1 = arith.constant 0 : i32
    return %c0_i32, %c0_i32_0 : i32, i32
  }
  func.func @transform_4(%arg0: i32) -> (i32, i32) {
    %c0_i32 = arith.constant 0 : i32
    %c0_i32_0 = arith.constant 0 : i32
    return %c0_i32, %arg0 : i32, i32
  }
  func.func @transform_5(%arg0: i32) -> (i32, i32, i32) {
    %c0_i32 = arith.constant 0 : i32
    %c0_i32_0 = arith.constant 0 : i32
    %c0_i32_1 = arith.constant 0 : i32
    %c0_i32_2 = arith.constant 0 : i32
    return %c0_i32, %c0_i32_0, %c0_i32_1 : i32, i32, i32
  }
}

</mosaic_0001>

<bundles_post_ra>
// kernel: tpu_custom_call.1
= control target key start
LH: loop header
LB: loop body
LE: loop exit
PB: predicated region body
PF: predicated region fallthrough
CT: control target
= control target key end

     0   :  { %11 = vsyncpa [#allocation3], 0  ;;  %s441_s0 = inlined_call_operand.hbm [shape: f32[8,256], index: 0, kind: input, shape index: {}]   ;;  %s442_s1 = inlined_call_operand.hbm [shape: f32[3,256], index: 1, kind: input, shape index: {}]   ;;  %s443_s2 = inlined_call_operand.hbm [shape: f32[16,16], index: 2, kind: input, shape index: {}]   ;;  %s444_s3 = inlined_call_operand.vmem [shape: f32[2,15], index: 3, kind: input, shape index: {}]   ;;  %s445_s4 = inlined_call_operand.hbm [shape: f32[3,8], index: 4, kind: output, shape index: {0}]   ;;  %s446_s5 = inlined_call_operand.vmem [shape: f32[3,16,5], index: 5, kind: output, shape index: {1}]  }
   0x1   :  { %12 = vsyncpa [#allocation6], 0 }
   0x2   :  { %13 = vsyncpa [#allocation4], 0  ;;  %s323_s18 = smov [#allocation5]   ;;  %s324_s20 = smov [#allocation2]  }
   0x3   :  { %s30_s19 = sshll.u32 %s323_s18, 4  ;;  %s20_s21 = sshll.u32 %s324_s20, 4  ;;  %s31_s19 = int_to_ptr.vmem [resolvable:$true] %s30_s19  ;;  %s21_s21 = int_to_ptr.vmem [resolvable:$true] %s20_s21 }
   0x4   :  { %s229_s24 = scalar_lea.hbm %s442_s1, 128 }
   0x5   :  { %p230_p0 = scmp.ne.s32.totalorder %s442_s1, %s229_s24  ;;  %p233_p1 = scmp.lt.u32.totalorder %s229_s24, %s442_s1 }
   0x7   :  { %p235_p2 = pnand %p233_p1, %p230_p0 }
   0x9   :  { %238 = shalt.err (!%p235_p2)
}
   0xa   :  { %s239_s29 = scalar_lea.vmem %s31_s19, 128  ;;  %p244_p4 = scmp.lt.s32.totalorder %s31_s19, %s31_s19 }
   0xb   :  { %p240_p3 = scmp.ne.s32.totalorder %s31_s19, %s239_s29  ;;  %p245_p5 = scmp.lt.s32.totalorder %s239_s29, %s239_s29 }
   0xd   :  { %p246_p6 = por %p245_p5, %p244_p4 }
   0xf   :  { %p247_p7 = pnand %p246_p6, %p240_p3 }
  0x11   :  { %250 = shalt.err (!%p247_p7)
}
  0x12   :  { %33 = dma.hbm_to_vmem [thread:$0]  %s442_s1, 128, %s31_s19, [#allocation6]  }
  0x13   :  { %s251_s9 = scalar_lea.hbm %s441_s0, 256 }
  0x14   :  { %p252_p8 = scmp.ne.s32.totalorder %s441_s0, %s251_s9  ;;  %p255_p9 = scmp.lt.u32.totalorder %s251_s9, %s441_s0 }
  0x16   :  { %p257_p10 = pnand %p255_p9, %p252_p8 }
  0x18   :  { %260 = shalt.err (!%p257_p10)
}
  0x19   :  { %s261_s14 = scalar_lea.vmem %s21_s21, 256  ;;  %p266_p12 = scmp.lt.s32.totalorder %s21_s21, %s21_s21 }
  0x1a   :  { %p262_p11 = scmp.ne.s32.totalorder %s21_s21, %s261_s14  ;;  %p267_p13 = scmp.lt.s32.totalorder %s261_s14, %s261_s14 }
  0x1c   :  { %p268_p0 = por %p267_p13, %p266_p12 }
  0x1e   :  { %p269_p1 = pnand %p268_p0, %p262_p11 }
  0x20   :  { %272 = shalt.err (!%p269_p1)
}
  0x21   :  { %23 = dma.hbm_to_vmem [thread:$0]  %s441_s0, 256, %s21_s21, [#allocation3]  }
  0x22   :  { %s325_s16 = smov [#allocation7]   ;;  %s273_s20 = scalar_lea.hbm %s443_s2, 256 }
  0x23   :  { %s39_s17 = sshll.u32 %s325_s16, 4  ;;  %p274_p2 = scmp.ne.s32.totalorder %s443_s2, %s273_s20  ;;  %s40_s17 = int_to_ptr.vmem [resolvable:$true] %s39_s17 }
  0x24   :  { %p277_p3 = scmp.lt.u32.totalorder %s273_s20, %s443_s2 }
  0x26   :  { %p279_p4 = pnand %p277_p3, %p274_p2 }
  0x28   :  { %282 = shalt.err (!%p279_p4)
}
  0x29   :  { %s283_s26 = scalar_lea.vmem %s40_s17, 256  ;;  %p288_p6 = scmp.lt.s32.totalorder %s40_s17, %s40_s17 }
  0x2a   :  { %p284_p5 = scmp.ne.s32.totalorder %s40_s17, %s283_s26  ;;  %p289_p7 = scmp.lt.s32.totalorder %s283_s26, %s283_s26 }
  0x2c   :  { %p290_p8 = por %p289_p7, %p288_p6 }
  0x2e   :  { %p291_p9 = pnand %p290_p8, %p284_p5 }
  0x30   :  { %294 = shalt.err (!%p291_p9)
}
  0x31   :  { %s326_s0 = smov 128   ;;  %s327_s21 = smov 8  }
  0x32   :  { %45 = dma.hbm_to_vmem [thread:$0]  %s443_s2, 256, %s40_s17, [#allocation6], %s326_s0, %s326_s0, %s327_s21  }
  0x33   :  { %317 = dma.done.wait [#allocation3], 256  }
  0x34   :  { %318 = vsyncadd [#allocation3], 4294967040 }
  0x35   :  { %319 = dma.done.wait [#allocation6], 384  }
  0x36   :  { %320 = vsyncadd [#allocation6], 4294966912  ;;  %v139_v0 = vld [vmem:[#allocation7] sm:$0xff]  ;;  %s328_s29 = smov 127   ;;  %v59_v1 = vld [vmem:[#allocation2 + $0x8] sm:$0xff]  ;;  %v144_v6 = vlaneseq  ;;  %v329_v11 = vmov 0  }
  0x37   :  { %161 = vrot.lane.b32.xlu0 %v139_v0, %s328_s29  ;;  %v58_v2 = vld [vmem:[#allocation2] sm:$0xff]  ;;  %v57_v3 = vld [vmem:[#allocation5] sm:$0x77]  ;;  %63 = vmatprep.subr.mxu0 %v59_v1  ;;  %vm171_vm4 = vcmask 39936   ;;  %s331_s10 = smov 123   ;;  %s332_s13 = smov [#allocation8]  }
  0x38   :  { %v140_v4 = vld [vmem:[#allocation7 + $0x8] sm:$0xff]  ;;  %v61_v5 = vcombine.high %v57_v3, %v57_v3  ;;  %64 = vmatpush1.xpose.msra.mxu0 %v58_v2  ;;  %v145_v8 = vshrl.u32 %v144_v6, 7  ;;  %s200_s14 = sshll.u32 %s332_s13, 4  ;;  %vm133_vm5 = vcmask 59392   ;;  %s201_s14 = int_to_ptr.vmem [resolvable:$true] %s200_s14 }
  0x39   :  { %v141_v7 = vld [vmem:[%s444_s3] sm:$0x1]  ;;  %v151_v9 = vld [vmem:[%s444_s3 + $0x1] sm:$0x1]  ;;  %s330_s3 = smov 118   ;;  %s295_s1 = scalar_lea.vmem %s201_s14, 64 }
  0x3a   :  { %127 = vmatprep.mubr.f32.mxu0 %v61_v5  ;;  %vm142_vm0 = vcmp.gt.f32.partialorder %v141_v7, 0.0  ;;  %v146_v10 = vsub.s32 0, %v145_v8  ;;  %vm152_vm1 = vcmp.gt.f32.partialorder %v151_v9, 0.0  ;;  %p296_p10 = scmp.ne.s32.totalorder %s201_s14, %s295_s1  ;;  %p300_p11 = scmp.lt.s32.totalorder %s201_s14, %s201_s14 }
  0x3b   :  { %163 = vrot.lane.b32.xlu0 %v140_v4, %s328_s29  ;;  %128 = vmatmul.mubr.f32.vlgmr.msra.gmra.mrb[0].mxu0 %v57_v3  ;;  %v143_v12 = vsel %vm142_vm0, 1, %v329_v11  ;;  %v153_v13 = vsel %vm152_vm1, 1, %v329_v11  ;;  %p301_p12 = scmp.lt.s32.totalorder %s295_s1, %s295_s1 }
  0x3c   :  { %v147_v14 = vrot.slane %v143_v12, %v146_v10  ;;  %v157_v15 = vrot.slane %v153_v13, %v146_v10 }
  0x3d   :  { %p302_p13 = por %p301_p12, %p300_p11 }
  0x3e   :  { %vm148_vm2 = vcmp.eq.s32.totalorder %v147_v14, 1  ;;  %vm158_vm3 = vcmp.eq.s32.totalorder %v157_v15, 1 }
  0x3f   :  { %v149_v16 = vsel %vm148_vm2, %v139_v0, -inf  ;;  %v150_v20 = vsel %vm148_vm2, %v140_v4, -inf  ;;  %p303_p0 = pnand %p302_p13, %p296_p10 }
  0xa9   :  { %v162_v17 = vpop.permute.xlu0 %161 }
  0xaa   :  { %v167_v18 = vsel %vm158_vm3, %v162_v17, -inf }
  0xab   :  { %v169_v19 = vmax.f32 %v149_v16, %v167_v18 }
  0xad   :  { %172 = vst.msk [vmem:[%s446_s5] sm:$0xff] %vm171_vm4, %v169_v19  ;;  %v164_v21 = vpop.permute.xlu0 %163  ;;  %185 = vrot.lane.b32.xlu0 %v169_v19, %s330_s3  ;;  %176 = vrot.lane.b32.xlu1 %v169_v19, %s331_s10 }
  0xae   :  { %v168_v22 = vsel %vm158_vm3, %v164_v21, -inf }
  0xaf   :  { %v170_v23 = vmax.f32 %v150_v20, %v168_v22 }
  0xb1   :  { %173 = vst.msk [vmem:[%s446_s5 + $0x8] sm:$0xff] %vm171_vm4, %v170_v23  ;;  %178 = vrot.lane.b32.xlu1 %v170_v23, %s331_s10 }
  0xb5   :  { %187 = vrot.lane.b32.xlu1 %v170_v23, %s330_s3 }
 0x10e   :  { %v129_v24 = vpop.f32.mrb[0].mxu0 }
 0x10f   :  { %v131_v25 = vpop.f32.mrb[1].mxu0  ;;  %134 = vst.msk [vmem:[#allocation8] sm:$0x7] %vm133_vm5, %v129_v24 }
 0x110   :  { %306 = shalt.err (!%p303_p0)
}
 0x111   :  { %s307_s17 = scalar_lea.hbm %s445_s4, 64 }
 0x112   :  { %p308_p1 = scmp.ne.s32.totalorder %s445_s4, %s307_s17  ;;  %p311_p2 = scmp.lt.u32.totalorder %s307_s17, %s445_s4 }
 0x114   :  { %p313_p3 = pnand %p311_p2, %p308_p1 }
 0x116   :  { %316 = shalt.err (!%p313_p3)
}
 0x117   :  { %203 = dma.vmem_to_hbm [thread:$0]  %s201_s14, 64, %s445_s4, [#allocation4]  }
 0x11f   :  { %v186_v26 = vpop.permute.xlu0 %185  ;;  %v177_v27 = vpop.permute.xlu1 %176 }
 0x120   :  { %216 = vst.msk [vmem:[%s446_s5 + $0x20] sm:$0xff] %vm171_vm4, %v186_v26  ;;  %214 = vst.msk [vmem:[%s446_s5 + $0x10] sm:$0xff] %vm171_vm4, %v177_v27 }
 0x123   :  { %v179_v28 = vpop.permute.xlu1 %178 }
 0x124   :  { %215 = vst.msk [vmem:[%s446_s5 + $0x18] sm:$0xff] %vm171_vm4, %v179_v28 }
 0x127   :  { %v188_v29 = vpop.permute.xlu1 %187 }
 0x128   :  { %217 = vst.msk [vmem:[%s446_s5 + $0x28] sm:$0xff] %vm171_vm4, %v188_v29 }
 0x129   :  { %321 = dma.done.wait [#allocation4], 64  }
 0x12a   :  { %322 = vsyncadd [#allocation4], 4294967232 }
 0x12b   :  { %211 = vsyncpa [#allocation3], 1 }
 0x12c   :  { %212 = vsyncpa [#allocation6], 1 }
 0x12d   :  { %213 = vsyncpa [#allocation4], 1 }

</bundles_post_ra>
